<compile_context>
chip_gen: v5e
topology: v5e:2x2
jax: 0.10.0
libtpu: 0.0.40
codegen_flags: <defaults>
</compile_context>

<pallas_src>
import jax
import jax.numpy as jnp
from jax.experimental import pallas as pl
from jax.experimental.pallas import tpu as pltpu


_MIN_PALLAS_BYTES = 256 * 1024          # below this, plain jnp.maximum wins
_TARGET_BLOCK_BYTES = 8 * 1024 * 1024   # ~8 MiB blocks: few, fat grid steps
_VMEM_LIMIT_BYTES = 48 * 1024 * 1024    # 2*in + 2*out @ 8 MiB + headroom (<64 MiB v7x)


def _relu_kernel(x_ref, o_ref):
    # Store-lean elementwise body: one load -> one store, dtype-safe zero.
    o_ref[...] = jnp.maximum(x_ref[...], jnp.zeros((), x_ref.dtype))


def _round_up(v, m):
    return ((v + m - 1) // m) * m


def _sublane_multiple(dtype):
    # f32 -> 8, bf16 -> 16, int8/fp8 -> 32 (sub-32-bit dtypes pack along sublanes).
    itemsize = jnp.dtype(dtype).itemsize
    return max(8, 32 // itemsize)


def _relu_2d(x2, block_rows=None, donate=False):
    """Run the Pallas relu kernel over a lane-dense (rows, lanes) slab."""
    rows, lanes = x2.shape
    dtype = x2.dtype
    itemsize = jnp.dtype(dtype).itemsize
    sub = _sublane_multiple(dtype)

    if block_rows is None:
        block_rows = max(sub, _TARGET_BLOCK_BYTES // (lanes * itemsize))

    if rows <= block_rows:
        # Single block equal to the full array dim (allowed regardless of the
        # sublane multiple) — no pipelining needed at this size.
        block_rows = rows
    else:
        block_rows = _round_up(block_rows, sub)

    grid = pl.cdiv(rows, block_rows)  # partial last block is padded/masked by Pallas

    return pl.pallas_call(
        _relu_kernel,
        out_shape=jax.ShapeDtypeStruct((rows, lanes), dtype),
        grid_spec=pltpu.PrefetchScalarGridSpec(
            num_scalar_prefetch=0,
            grid=(grid,),
            in_specs=[pl.BlockSpec((block_rows, lanes), lambda i: (i, 0))],
            out_specs=pl.BlockSpec((block_rows, lanes), lambda i: (i, 0)),
        ),
        compiler_params=pltpu.CompilerParams(
            dimension_semantics=("parallel",),   # lets v7x shard tiles over 2 TCs
            vmem_limit_bytes=_VMEM_LIMIT_BYTES,
        ),
        input_output_aliases=({0: 0} if donate else {}),
    )(x2)


def perceptron_forward(x, w=None, b=None, *, lanes=None, block_rows=None,
                       min_pallas_bytes=_MIN_PALLAS_BYTES, donate_input=False):
    """Pallas implementation of Perceptron.forward: returns relu(x).

    w, b (the Linear(1, 1) parameters) are accepted for API fidelity with the
    PyTorch module but are intentionally unused: the reference forward
    discards fc(x), so the dead matmul is not emitted in the kernel.
    """
    del w, b  # fc(x) is dead code in the reference module.

    orig_shape = x.shape
    dtype = x.dtype
    n = int(x.size)
    zero = jnp.zeros((), dtype)

    # Tiny-input fast path: pallas_call launch overhead can't be amortized.
    if n == 0 or n * jnp.dtype(dtype).itemsize < min_pallas_bytes:
        return jnp.maximum(x, zero)

    xf = jnp.ravel(x)  # contiguous, layout-preserving (bitcast-level reshape)

    # Lane-dense slab: last dim must be a multiple of 128 (full vreg lanes).
    # Prefer a lane count that divides n exactly so the reshape is free.
    if lanes is None:
        for cand in (1024, 512, 256, 128):
            if n % cand == 0:
                lanes = cand
                break
        else:
            lanes = 1024  # ragged: prefix/tail split below
    assert lanes % 128 == 0

    n_main = (n // lanes) * lanes
    if n_main == 0:
        return jnp.maximum(x, zero)

    if n_main == n:
        # Fully lane-aligned: zero-copy in, zero-copy out.
        out2 = _relu_2d(xf.reshape(n // lanes, lanes), block_rows, donate_input)
        return out2.reshape(orig_shape)

    # Ragged size: aligned prefix through the kernel, tiny (<lanes) tail via
    # plain jnp.maximum — no whole-array pad / slice passes.
    head = _relu_2d(xf[:n_main].reshape(n_main // lanes, lanes), block_rows).ravel()
    tail = jnp.maximum(xf[n_main:], zero)
    return jnp.concatenate([head, tail]).reshape(orig_shape)


if __name__ == "__main__":
    key = jax.random.PRNGKey(0)
    kx1, kx2, kx3, kw, kb = jax.random.split(key, 5)

    # Linear(1, 1) params (PyTorch default init: U(-1, 1) since fan_in = 1).
    # Passed for module fidelity; their fc output is discarded by the reference.
    w = jax.random.uniform(kw, (1, 1), jnp.float32, minval=-1.0, maxval=1.0)
    b = jax.random.uniform(kb, (1,), jnp.float32, minval=-1.0, maxval=1.0)

    # --- Case 1: tiny (N, in_features=1) batch -> small-input fast path.
    x1 = jax.random.normal(kx1, (8, 1), dtype=jnp.float32)
    o1 = jax.block_until_ready(perceptron_forward(x1, w, b))
    assert o1.shape == x1.shape
    assert jnp.allclose(o1, jnp.maximum(x1, 0.0), atol=1e-6), "mismatch [small]"

    # --- Case 2: lane-aligned batch, forced through the Pallas kernel with a
    #             multi-step pipelined grid (rows=32, block_rows=8 -> grid=4).
    x2 = jax.random.normal(kx2, (32 * 1024, 1), dtype=jnp.float32)
    o2 = jax.block_until_ready(
        perceptron_forward(x2, w, b, block_rows=8, min_pallas_bytes=0))
    assert o2.shape == x2.shape
    assert jnp.allclose(o2, jnp.maximum(x2, 0.0), atol=1e-6), "mismatch [aligned]"

    # --- Case 3: ragged batch -> aligned prefix through the kernel + jnp tail.
    x3 = jax.random.normal(kx3, (4096 + 37, 1), dtype=jnp.float32)
    o3 = jax.block_until_ready(perceptron_forward(x3, w, b, min_pallas_bytes=0))
    assert o3.shape == x3.shape
    assert jnp.allclose(o3, jnp.maximum(x3, 0.0), atol=1e-6), "mismatch [ragged]"

    print("KERNEL_OK")
</pallas_src>

<mosaic_0001>
module attributes {stable_mosaic.version = 11 : i64} {
  func.func @_relu_kernel(%arg0: i32, %arg1: memref<8x1024xf32, #tpu.memory_space<vmem>>, %arg2: memref<8x1024xf32, #tpu.memory_space<vmem>>) attributes {dimension_semantics = [#tpu.dimension_semantics<parallel>], iteration_bounds = array<i64: 4>, scalar_prefetch = 0 : i64, scratch_operands = 0 : i64, tpu.core_type = #tpu.core_type<tc>, window_params = [{transform_indices = @transform_0, window_bounds = array<i64: 8, 1024>}, {transform_indices = @transform_1, window_bounds = array<i64: 8, 1024>}]} {
    %c0 = arith.constant 0 : index
    %c0_0 = arith.constant 0 : index
    %0 = vector.load %arg1[%c0, %c0_0] : memref<8x1024xf32, #tpu.memory_space<vmem>>, vector<8x1024xf32>
    %cst = arith.constant 0.000000e+00 : f32
    %1 = vector.broadcast %cst : f32 to vector<8x1024xf32>
    %2 = arith.maximumf %0, %1 : vector<8x1024xf32>
    %c0_1 = arith.constant 0 : index
    %c0_2 = arith.constant 0 : index
    %3 = vector.load %arg2[%c0_1, %c0_2] : memref<8x1024xf32, #tpu.memory_space<vmem>>, vector<8x1024xf32>
    tpu.vector_store %arg2[%c0_1, %c0_2], %2 {strides = array<i32>} : memref<8x1024xf32, #tpu.memory_space<vmem>>, vector<8x1024xf32>,
    return
  }
  func.func @transform_0(%arg0: i32) -> (i32, i32) {
    %c0_i32 = arith.constant 0 : i32
    %c0_i32_0 = arith.constant 0 : i32
    return %arg0, %c0_i32 : i32, i32
  }
  func.func @transform_1(%arg0: i32) -> (i32, i32) {
    %c0_i32 = arith.constant 0 : i32
    %c0_i32_0 = arith.constant 0 : i32
    return %arg0, %c0_i32 : i32, i32
  }
}

</mosaic_0001>

<bundles_post_ra>
// kernel: tpu_custom_call.1
= control target key start
LH: loop header
LB: loop body
LE: loop exit
PB: predicated region body
PF: predicated region fallthrough
CT: control target
= control target key end

     0   :  { %6 = vsyncpa [#allocation3], 0  ;;  %s541_s0 = inlined_call_operand.hbm [shape: f32[32,1024], index: 0, kind: input, shape index: {}]   ;;  %s542_s1 = inlined_call_operand.hbm [shape: f32[32,1024], index: 1, kind: output, shape index: {}]  }
   0x1   :  { %8 = vsyncpa [#allocation3 + $0x1], 0 }
   0x2   :  { %9 = vsyncpa [#allocation4], 0 }
   0x3   :  { %11 = vsyncpa [#allocation4 + $0x1], 0  ;;  %s416_s6 = smov 0   ;;  %s418_s7 = smov 0  }
   0x4   :  { %s420_s8 = smov 0   ;;  %s422_s9 = smov 0  }
   0x5 LB: > { %s437_s10 = sadd.s32 4294967295, %s404_s9   ;;  %s246_s11 = sadd.s32 4294967294, %s404_s9   ;;  %s404_s9 = sphi %s422_s9, %s551_s9   ;;  %s400_s8 = sphi %s420_s8, %s550_s8   ;;  %s396_s7 = sphi %s418_s7, %s549_s7   ;;  %s392_s6 = sphi %s416_s6, %s548_s6  }
   0x6   : > { %s441_s12 = sadd.s32 1, %s404_s9   ;;  %s24_s13 = sadd.s32 1, %s400_s8 }
   0x7   : > { %s21_s14 = ssub.s32 %s404_s9, %s441_s12  ;;  %p31_p0 = scmp.ne.s32.totalorder %s400_s8, %s396_s7 }
   0x8   : > { %p22_p1 = scmp.eq.s32.totalorder %s21_s14, 0  ;;  %p32_p2 = scmp.eq.s32.totalorder %s404_s9, 0 }
   0x9   : > { %p37_p3 = scmp.ne.s32.totalorder %s396_s7, %s392_s6  ;;  %p38_p4 = scmp.eq.s32.totalorder %s437_s10, 0 }
   0xa   : > { %s453_s15 = scalar_select %p22_p1, %s400_s8, %s24_s13  }
   0xb   : > { %p455_p5 = por %p32_p2, %p31_p0  ;;  %p459_p6 = por %p38_p4, %p37_p3 }
   0xc   : > { %p61_p7 = scmp.eq.s32.totalorder %s437_s10, 3  ;;  %p67_p8 = scmp.eq.s32.totalorder %s246_s11, 3 }
   0xd   : > { %p274_p9 = scmp.lt.s32.totalorder %s404_s9, 4  ;;  %s87_s20 = sand.u32 1, %s400_s8  }
   0xe   : > { %p465_p10 = por %p61_p7, %p31_p0  ;;  %p469_p11 = por %p67_p8, %p37_p3 }
   0xf   : > { %s260_s21 = sshll.u32 %s404_s9, 6  ;;  %s249_s22 = sshll.u32 %s87_s20, 6 }
  0x10   : > { %s96_s25 = scalar_lea.hbm %s541_s0, %s260_s21  ;;  %s91_s27 = scalar_lea.vmem [#allocation2], %s249_s22 }
  0x11   : > { %s98_s26 = sshll.u32 %s96_s25, 4  ;;  %s100_s28 = sshll.u32 %s91_s27, 4  ;;  %s99_s26 = int_to_ptr.hbm [resolvable:$true] %s98_s26  ;;  %s101_s28 = int_to_ptr.vmem [resolvable:$true] %s100_s28 }
  0x12   : > { %p480_p12 = pnand %p274_p9, %p455_p5  ;;  %p252_p13 = scmp.ge.s32.totalorder %s404_s9, 1 }
  0x13   : > { %p105_p0 = scmp.lt.s32.totalorder %s404_s9, 5  ;;  %s88_s30 = scalar_lea.sflag [#allocation3], %s87_s20 }
  0x14   : > { %s308_s2 = sshra.s32 %s99_s26, 4  ;;  %p312_p2 = pneg %p480_p12  ;;  %s309_s2 = int_to_ptr.hbm [resolvable:$true] %s308_s2 }
  0x15   : > { %s310_s3 = scalar_lea.hbm %s309_s2, 64  ;;  %s315_s11 = scalar_lea.hbm %s541_s0, 256 }
  0x16   : > { %p311_p1 = scmp.ne.s32.totalorder %s309_s2, %s310_s3  ;;  %p316_p5 = scmp.lt.s32.totalorder %s309_s2, %s541_s0 }
  0x17   : > { %p317_p7 = scmp.lt.s32.totalorder %s315_s11, %s310_s3 }
  0x18   : > { %p313_p3 = pnand %p312_p2, %p311_p1 }
  0x19   : > { %p318_p8 = por %p317_p7, %p316_p5 }
  0x1a   : > { %p314_p4 = pneg %p313_p3 }
  0x1c   : > { %p319_p9 = pnand %p318_p8, %p314_p4 }
  0x1e   : > { %322 = shalt.err (!%p319_p9)
}
  0x1f   : > { %269 = dma.hbm_to_vmem [thread:$0]  (!%p480_p12), %s99_s26, 1024, %s101_s28, %s88_s30  }
  0x20   : > { %p106_p1 = pnand %p252_p13, %p105_p0 }
  0x21   : > { %s501_s16 = sand.u32 (!%p106_p1), 1, %s396_s7  }
  0x22   : > { %109 = sbr.rel (%p106_p1) target bundleno = 56 (0x38), region = 24  ;;  %s253_s20 = sshll.u32 (!%p106_p1), %s501_s16, 6 }
  0x23   : > { %s112_s21 = scalar_lea.sflag (!%p106_p1), [#allocation3], %s501_s16  ;;  %s115_s22 = scalar_lea.vmem (!%p106_p1), [#allocation2], %s253_s20 }
  0x27   : > { %383 = dma.done.wait (%p459_p6), %s112_s21, 1024  }
  0x28   : > { %385 = vsyncadd (%p459_p6), %s112_s21, 4294966272  ;;  %s261_s23 = sshll.u32 %s437_s10, 6  ;;  %v135_v0 = vld [vmem:[%s115_s22] sm:$0xff]  ;;  %v136_v1 = vld [vmem:[%s115_s22 + $0x8] sm:$0xff]  ;;  %s134_s27 = scalar_lea.vmem [#allocation5], %s253_s20 }
  0x29   : > { %v137_v2 = vld [vmem:[%s115_s22 + $0x10] sm:$0xff]  ;;  %v143_v3 = vmax.f32 %v135_v0, 0.0  ;;  %v144_v4 = vmax.f32 %v136_v1, 0.0  ;;  %v138_v6 = vld [vmem:[%s115_s22 + $0x18] sm:$0xff]  ;;  %v139_v7 = vld [vmem:[%s115_s22 + $0x20] sm:$0xff]  ;;  %s171_s26 = scalar_lea.hbm %s542_s1, %s261_s23  ;;  %s173_s10 = sshll.u32 %s134_s27, 4  ;;  %s174_s10 = int_to_ptr.vmem [resolvable:$true] %s173_s10 }
  0x2a   : > { %v145_v5 = vmax.f32 %v137_v2, 0.0  ;;  %v140_v8 = vld [vmem:[%s115_s22 + $0x28] sm:$0xff]  ;;  %v146_v9 = vmax.f32 %v138_v6, 0.0  ;;  %v141_v10 = vld [vmem:[%s115_s22 + $0x30] sm:$0xff]  ;;  %v147_v11 = vmax.f32 %v139_v7, 0.0  ;;  %v142_v12 = vld [vmem:[%s115_s22 + $0x38] sm:$0xff] }
  0x2b   : > { %151 = vst [vmem:[%s134_s27] sm:$0xff] %v143_v3  ;;  %v148_v13 = vmax.f32 %v140_v8, 0.0  ;;  %v149_v14 = vmax.f32 %v141_v10, 0.0  ;;  %s175_s17 = sshll.u32 %s171_s26, 4  ;;  %v150_v15 = vmax.f32 %v142_v12, 0.0  ;;  %s160_s28 = scalar_lea.sflag [#allocation4], %s501_s16  ;;  %s176_s17 = int_to_ptr.hbm [resolvable:$true] %s175_s17 }
  0x2c   : > { %152 = vst [vmem:[%s134_s27 + $0x8] sm:$0xff] %v144_v4  ;;  %s352_s29 = sshra.s32 %s176_s17, 4  ;;  %s358_s4 = scalar_lea.hbm %s542_s1, 256  ;;  %s353_s29 = int_to_ptr.hbm [resolvable:$true] %s352_s29 }
  0x2d   : > { %153 = vst [vmem:[%s134_s27 + $0x10] sm:$0xff] %v145_v5  ;;  %s354_s30 = scalar_lea.hbm %s353_s29, 64  ;;  %p359_p0 = scmp.lt.s32.totalorder %s353_s29, %s542_s1 }
  0x2e   : > { %154 = vst [vmem:[%s134_s27 + $0x18] sm:$0xff] %v146_v9  ;;  %p355_p6 = scmp.ne.s32.totalorder %s353_s29, %s354_s30  ;;  %p360_p2 = scmp.lt.s32.totalorder %s358_s4, %s354_s30 }
  0x2f   : > { %155 = vst [vmem:[%s134_s27 + $0x20] sm:$0xff] %v147_v11 }
  0x30   : > { %156 = vst [vmem:[%s134_s27 + $0x28] sm:$0xff] %v148_v13  ;;  %p356_p12 = pnand %p355_p6, %p465_p10  ;;  %p361_p3 = por %p360_p2, %p359_p0 }
  0x31   : > { %157 = vst [vmem:[%s134_s27 + $0x30] sm:$0xff] %v149_v14 }
  0x32   : > { %158 = vst [vmem:[%s134_s27 + $0x38] sm:$0xff] %v150_v15  ;;  %p357_p13 = pneg %p356_p12 }
  0x34   : > { %p362_p4 = pnand %p361_p3, %p357_p13 }
  0x36   : > { %365 = shalt.err (!%p362_p4)
}
  0x37   : > { %264 = dma.vmem_to_hbm [thread:$0]  (%p465_p10), %s174_s10, 1024, %s176_s17, %s160_s28  }
  0x38 PF: > { %p275_p5 = scmp.ge.s32.totalorder %s404_s9, 2  ;;  %s187_s13 = sand.u32 1, %s392_s6  }
  0x39   : > { %s188_s14 = scalar_lea.sflag [#allocation4], %s187_s13 }
  0x3a   : > { %p271_p7 = pnand %p275_p5, %p469_p11 }
  0x3c   : > { %p272_p8 = pneg %p271_p7 }
  0x3e   : > { %387 = dma.done.wait (%p272_p8), %s188_s14, 1024  }
  0x3f   : > { %389 = vsyncadd (%p272_p8), %s188_s14, 4294966272  ;;  %p14_p9 = scmp.ge.s32.totalorder %s441_s12, 6   ;;  %s548_s6 = smov %s396_s7 }
  0x40   : > { %s549_s7 = smov %s400_s8  ;;  %s550_s8 = smov %s453_s15 }
  0x41   : > { %s551_s9 = smov %s441_s12  ;;  %16 = sbr.rel (!%p14_p9) target bundleno = 5 (0x5), region = 69 }
  0x46   :  { %194 = vsyncpa [#allocation3], 1 }
  0x47   :  { %196 = vsyncpa [#allocation3 + $0x1], 1 }
  0x48   :  { %197 = vsyncpa [#allocation4], 1 }
  0x49   :  { %199 = vsyncpa [#allocation4 + $0x1], 1 }

</bundles_post_ra>
